<compile_context>
chip_gen: v7x
topology: tpu7x:2x2x1
jax: 0.10.0
libtpu: 0.0.40
codegen_flags: <defaults>
</compile_context>

<pallas_src>
import functools

import jax
import jax.numpy as jnp
from jax.experimental import pallas as pl
from jax.experimental.pallas import tpu as pltpu

EPS = 1e-5


def _round_up(n: int, m: int) -> int:
    return ((n + m - 1) // m) * m


def _vmem_limit_bytes() -> int:
    """Generation-aware VMEM budget: physical per-core VMEM minus pipelining headroom."""
    cap = 64 * 1024 * 1024  # conservative default (v7x has 64 MiB per TensorCore)
    try:
        cap = int(pltpu.get_tpu_info().vmem_capacity_bytes)
    except Exception:
        pass
    # Leave ~25% headroom for compiler scratch / double-buffering slack; cap at 100 MiB
    # so v5e/v6e (128 MiB physical) still keep margin.
    return min((cap * 3) // 4, 100 * 1024 * 1024)


def _est_vmem_bytes(batch, x_cols, ci_tile, co_tile, out_itemsize, *,
                    use_scratch, weight_buffers=2):
    """Rough VMEM footprint of one pipelined step (double-buffered inputs/outputs)."""
    x_bytes = 2 * batch * x_cols * 2                       # bf16 x
    w_bytes = weight_buffers * ci_tile * co_tile * 2       # bf16 weights
    o_bytes = 2 * batch * co_tile * out_itemsize           # output block
    acc_bytes = batch * co_tile * 4 if use_scratch else 0  # f32 accumulator (bf16 out)
    misc = 2 * 2 * co_tile * 4                             # gamma/beta rows
    return x_bytes + w_bytes + o_bytes + acc_bytes + misc


def choose_tiles(batch, ci, co, *, ci_tile=1024, co_tile=512, out_itemsize=4,
                 vmem_limit=None):
    """Pick lane-dense (128-multiple) tiles that fit the VMEM budget."""
    vmem_limit = _vmem_limit_bytes() if vmem_limit is None else vmem_limit
    budget = int(0.8 * vmem_limit)
    ci_tile = min(ci_tile, _round_up(ci, 128))
    co_tile = min(co_tile, _round_up(co, 128))
    # v7x: the leading "parallel" Co axis shards across the 2 TensorCores; keep >= 2 Co
    # tiles when the feature dim allows it (costs only one extra grid step on 1-TC chips).
    if _round_up(co, co_tile) // co_tile < 2 and _round_up(co, 128) >= 256:
        co_tile = max(128, _round_up(_round_up(co, 128) // 2, 128))
    # Shrink tiles until the streamed-x footprint fits the VMEM budget.
    while _est_vmem_bytes(batch, ci_tile, ci_tile, co_tile, out_itemsize,
                          use_scratch=(out_itemsize != 4)) > budget:
        if ci_tile > 128:
            ci_tile = max(128, _round_up(ci_tile // 2, 128))
        elif co_tile > 128:
            co_tile = max(128, _round_up(co_tile // 2, 128))
        else:
            # TODO(synk): very large batches need a B-tiled partial-stats (sum/sum-sq)
            # two-pass variant; the whole-batch-per-tile design caps B at the VMEM budget.
            raise ValueError(
                f"batch={batch} too large for whole-batch BN tiles within "
                f"{vmem_limit} bytes of VMEM")
    return ci_tile, co_tile, vmem_limit


def prepare_linbnhs_params(w, gamma, beta, *, batch_hint, ci_tile=1024, co_tile=512,
                           matmul_dtype=jnp.bfloat16, out_dtype=jnp.float32):
    """One-time prep of the PyTorch-layout (Co, Ci) Linear weight + BN affine params.

    Hoisted out of the per-call wrapper so the f32 weights are not re-read / re-padded /
    re-cast on every forward.  The Linear bias is intentionally not taken: training-mode
    BN subtracts the batch mean, which cancels a per-feature bias exactly.
    """
    co, ci = w.shape
    out_itemsize = jnp.dtype(out_dtype).itemsize
    ci_tile, co_tile, vmem_limit = choose_tiles(
        batch_hint, ci, co, ci_tile=ci_tile, co_tile=co_tile,
        out_itemsize=out_itemsize)
    ci_p = _round_up(ci, ci_tile)
    co_p = _round_up(co, co_tile)
    w_p = jnp.pad(jnp.asarray(w).T.astype(matmul_dtype),
                  ((0, ci_p - ci), (0, co_p - co)))
    gamma_p = jnp.pad(jnp.reshape(jnp.asarray(gamma), (1, co)).astype(jnp.float32),
                      ((0, 0), (0, co_p - co)), constant_values=1.0)
    beta_p = jnp.pad(jnp.reshape(jnp.asarray(beta), (1, co)).astype(jnp.float32),
                     ((0, 0), (0, co_p - co)))
    return dict(w_p=w_p, gamma_p=gamma_p, beta_p=beta_p, ci=ci, co=co,
                ci_p=ci_p, co_p=co_p, ci_tile=ci_tile, co_tile=co_tile,
                matmul_dtype=matmul_dtype, out_dtype=out_dtype,
                vmem_limit=vmem_limit)


def linbnhs_kernel(x_ref, w_ref, gamma_ref, beta_ref, o_ref, *acc_scratch,
                   eps, ci_tile, x_resident):
    # With an f32 output, the o block index (0, j) is constant along the K axis, so the
    # output block stays VMEM-resident and we accumulate into it directly (no scratch).
    acc_ref = acc_scratch[0] if acc_scratch else o_ref
    k = pl.program_id(1)

    @pl.when(k == 0)
    def _init():
        acc_ref[...] = jnp.zeros_like(acc_ref)

    if x_resident:
        start = pl.multiple_of(k * ci_tile, 128)
        x_blk = x_ref[:, pl.ds(start, ci_tile)]
    else:
        x_blk = x_ref[...]

    # Linear (no bias: cancelled exactly by the BN mean subtraction); bf16 MXU operands,
    # f32 accumulation.
    acc_ref[...] += jnp.dot(x_blk, w_ref[...], preferred_element_type=jnp.float32)

    @pl.when(k == pl.num_programs(1) - 1)
    def _finalize():
        y = acc_ref[...]                                        # (B, co_tile) f32
        # BatchNorm1d, training-mode batch stats (biased variance), folded into a single
        # per-feature scale/shift row -> epilogue is one mul + one add per element.
        mean = jnp.mean(y, axis=0, keepdims=True)               # (1, co_tile)
        diff = y - mean
        var = jnp.mean(diff * diff, axis=0, keepdims=True)      # (1, co_tile)
        scale = gamma_ref[...] * jax.lax.rsqrt(var + eps)
        shift = beta_ref[...] - mean * scale
        y_bn = y * scale + shift
        # Hardswish: x * relu6(x + 3) / 6 ; single fused lane-dense store.
        o_ref[...] = (y_bn * jnp.clip(y_bn + 3.0, 0.0, 6.0) * (1.0 / 6.0)
                      ).astype(o_ref.dtype)


def lin_bn_hs(x, params, *, eps=EPS, weight_buffers=2):
    """x: (B, Ci) f32; params: output of prepare_linbnhs_params.

    Returns (B, Co) = Hardswish(BatchNorm1d(x @ W.T)) in params['out_dtype'].
    """
    B, Ci = x.shape
    assert Ci == params["ci"], (Ci, params["ci"])
    # PyTorch raises for training-mode BatchNorm1d with a single-sample batch.
    assert B > 1, "BatchNorm1d (training mode) requires batch size > 1"

    ci_tile, co_tile = params["ci_tile"], params["co_tile"]
    ci_p, co_p = params["ci_p"], params["co_p"]
    out_dtype = params["out_dtype"]
    out_itemsize = jnp.dtype(out_dtype).itemsize
    use_scratch = jnp.dtype(out_dtype) != jnp.dtype(jnp.float32)
    vmem_limit = params["vmem_limit"]
    budget = int(0.8 * vmem_limit)

    x_p = jnp.pad(x.astype(params["matmul_dtype"]), ((0, 0), (0, ci_p - Ci)))

    # Keep x VMEM-resident across the whole grid when it fits; otherwise stream
    # (B, ci_tile) blocks (re-fetched once per Co tile).
    x_resident = _est_vmem_bytes(B, ci_p, ci_tile, co_tile, out_itemsize,
                                 use_scratch=use_scratch,
                                 weight_buffers=weight_buffers) <= budget

    n_co = co_p // co_tile
    n_k = ci_p // ci_tile
    grid = (n_co, n_k)  # Co tiles: "parallel" (megacore), K tiles: "arbitrary" (last)

    if x_resident:
        x_spec = pl.BlockSpec((B, ci_p), lambda j, k: (0, 0))
    else:
        x_spec = pl.BlockSpec((B, ci_tile), lambda j, k: (0, k))

    w_spec_kwargs = {}
    if weight_buffers != 2:  # optional deeper pipelining if weight DMA is exposed
        w_spec_kwargs["pipeline_mode"] = pl.Buffered(weight_buffers)
    w_spec = pl.BlockSpec((ci_tile, co_tile), lambda j, k: (k, j), **w_spec_kwargs)

    scratch_shapes = ([pltpu.VMEM((B, co_tile), jnp.float32)] if use_scratch else [])

    # CostEstimate reflects actual HBM traffic: x once if resident, else once per Co tile.
    x_bytes = int(x_p.size) * 2 * (1 if x_resident else n_co)
    bytes_accessed = (x_bytes + int(params["w_p"].size) * 2
                      + B * co_p * out_itemsize + 2 * co_p * 4)

    out_p = pl.pallas_call(
        functools.partial(linbnhs_kernel, eps=eps, ci_tile=ci_tile,
                          x_resident=x_resident),
        out_shape=jax.ShapeDtypeStruct((B, co_p), out_dtype),
        grid_spec=pltpu.PrefetchScalarGridSpec(
            num_scalar_prefetch=0,
            grid=grid,
            in_specs=[
                x_spec,                                            # x
                w_spec,                                            # W.T (pre-packed)
                pl.BlockSpec((1, co_tile), lambda j, k: (0, j)),   # gamma
                pl.BlockSpec((1, co_tile), lambda j, k: (0, j)),   # beta
            ],
            out_specs=pl.BlockSpec((B, co_tile), lambda j, k: (0, j)),
            scratch_shapes=scratch_shapes,
        ),
        compiler_params=pltpu.CompilerParams(
            dimension_semantics=("parallel", "arbitrary"),
            vmem_limit_bytes=vmem_limit,
        ),
        cost_estimate=pl.CostEstimate(
            flops=2 * B * ci_p * co_p,
            transcendentals=0,
            bytes_accessed=int(bytes_accessed),
        ),
    )(x_p, params["w_p"], params["gamma_p"], params["beta_p"])

    return out_p[:, :params["co"]]


def reference(x, w, b, gamma, beta, *, eps=EPS, matmul_dtype=jnp.bfloat16):
    """Pure-JAX reference with the Linear bias INCLUDED (it cancels under BN).

    Matmul done in bf16 to match the kernel's MXU dtype; pass matmul_dtype=jnp.float32
    for a stricter f32 comparison.
    """
    y = jnp.dot(x.astype(matmul_dtype), w.T.astype(matmul_dtype),
                preferred_element_type=jnp.float32) + b
    mean = y.mean(axis=0, keepdims=True)
    var = ((y - mean) ** 2).mean(axis=0, keepdims=True)
    y_bn = (y - mean) / jnp.sqrt(var + eps) * gamma + beta
    return y_bn * jnp.clip(y_bn + 3.0, 0.0, 6.0) / 6.0


if __name__ == "__main__":
    B, Ci, Co = 8, 16, 32

    key = jax.random.PRNGKey(0)
    kx, kw, kb = jax.random.split(key, 3)

    x = jax.random.normal(kx, (B, Ci), dtype=jnp.float32)

    # nn.Linear-style init (uniform, bound 1/sqrt(Ci)); PyTorch stores W as (Co, Ci).
    bound = 1.0 / (Ci ** 0.5)
    w = jax.random.uniform(kw, (Co, Ci), minval=-bound, maxval=bound, dtype=jnp.float32)
    b = jax.random.uniform(kb, (1, Co), minval=-bound, maxval=bound, dtype=jnp.float32)
    gamma = jnp.ones((1, Co), dtype=jnp.float32)   # BN weight
    beta = jnp.zeros((1, Co), dtype=jnp.float32)   # BN bias

    # One-time weight prep (hoisted out of the per-call path); the Linear bias is not
    # passed: training-mode BN cancels it exactly.
    params = prepare_linbnhs_params(w, gamma, beta, batch_hint=B)

    out = lin_bn_hs(x, params)
    out = jax.block_until_ready(out)

    ref = reference(x, w, b, gamma, beta)
    assert out.shape == (B, Co)
    assert jnp.allclose(out, ref, atol=1e-3, rtol=1e-3), float(
        jnp.max(jnp.abs(out - ref))
    )

    print("KERNEL_OK")
</pallas_src>

<mosaic_0001>
module attributes {stable_mosaic.version = 11 : i64} {
  func.func @linbnhs_kernel(%arg0: i32, %arg1: i32, %arg2: memref<8x128xbf16, #tpu.memory_space<vmem>>, %arg3: memref<128x128xbf16, #tpu.memory_space<vmem>>, %arg4: memref<1x128xf32, #tpu.memory_space<vmem>>, %arg5: memref<1x128xf32, #tpu.memory_space<vmem>>, %arg6: memref<8x128xf32, #tpu.memory_space<vmem>>) attributes {dimension_semantics = [#tpu.dimension_semantics<parallel>, #tpu.dimension_semantics<arbitrary>], iteration_bounds = array<i64: 1, 1>, scalar_prefetch = 0 : i64, scratch_operands = 0 : i64, tpu.core_type = #tpu.core_type<tc>, window_params = [{pipeline_mode = #tpu.pipeline_mode<synchronous>, transform_indices = @transform_0, window_bounds = array<i64: 8, 128>}, {transform_indices = @transform_1, window_bounds = array<i64: 128, 128>}, {transform_indices = @transform_2, window_bounds = array<i64: 1, 128>}, {transform_indices = @transform_3, window_bounds = array<i64: 1, 128>}, {transform_indices = @transform_4, window_bounds = array<i64: 8, 128>}]} {
    %c0_i32 = arith.constant 0 : i32
    %0 = arith.cmpi eq, %arg1, %c0_i32 : i32
    %1 = arith.extui %0 : i1 to i32
    %c0_i32_0 = arith.constant 0 : i32
    %2 = arith.cmpi ne, %1, %c0_i32_0 : i32
    scf.if %2 {
      %cst_9 = arith.constant 0.000000e+00 : f32
      %15 = vector.broadcast %cst_9 : f32 to vector<8x128xf32>
      %c0_10 = arith.constant 0 : index
      %c0_11 = arith.constant 0 : index
      %16 = vector.load %arg6[%c0_10, %c0_11] : memref<8x128xf32, #tpu.memory_space<vmem>>, vector<8x128xf32>
      tpu.vector_store %arg6[%c0_10, %c0_11], %15 {strides = array<i32>} : memref<8x128xf32, #tpu.memory_space<vmem>>, vector<8x128xf32>,
    } else {
    }
    %c128_i32 = arith.constant 128 : i32
    %3 = arith.muli %arg1, %c128_i32 : i32
    %4 = tpu.assume_multiple %3, 128 : i32
    %c0 = arith.constant 0 : index
    %5 = arith.index_cast %4 : i32 to index
    %6 = vector.load %arg2[%c0, %5] : memref<8x128xbf16, #tpu.memory_space<vmem>>, vector<8x128xbf16>
    %c0_1 = arith.constant 0 : index
    %c0_2 = arith.constant 0 : index
    %7 = vector.load %arg6[%c0_1, %c0_2] : memref<8x128xf32, #tpu.memory_space<vmem>>, vector<8x128xf32>
    %c0_3 = arith.constant 0 : index
    %c0_4 = arith.constant 0 : index
    %8 = vector.load %arg3[%c0_3, %c0_4] : memref<128x128xbf16, #tpu.memory_space<vmem>>, vector<128x128xbf16>
    %cst = arith.constant dense<0.000000e+00> : vector<8x128xf32>
    %9 = tpu.matmul %6, %8, %cst {dimension_numbers = #tpu.dot_dimension_numbers<[1], [0], [0], [1], [0, 0, 1, 1], [], []>} : vector<8x128xbf16>, vector<128x128xbf16>, vector<8x128xf32> -> vector<8x128xf32>
    %10 = arith.addf %7, %9 : vector<8x128xf32>
    %c0_5 = arith.constant 0 : index
    %c0_6 = arith.constant 0 : index
    %11 = vector.load %arg6[%c0_5, %c0_6] : memref<8x128xf32, #tpu.memory_space<vmem>>, vector<8x128xf32>
    tpu.vector_store %arg6[%c0_5, %c0_6], %10 {strides = array<i32>} : memref<8x128xf32, #tpu.memory_space<vmem>>, vector<8x128xf32>,
    %c0_i32_7 = arith.constant 0 : i32
    %12 = arith.cmpi eq, %arg1, %c0_i32_7 : i32
    %13 = arith.extui %12 : i1 to i32
    %c0_i32_8 = arith.constant 0 : i32
    %14 = arith.cmpi ne, %13, %c0_i32_8 : i32
    scf.if %14 {
      %c0_9 = arith.constant 0 : index
      %c0_10 = arith.constant 0 : index
      %15 = vector.load %arg6[%c0_9, %c0_10] : memref<8x128xf32, #tpu.memory_space<vmem>>, vector<8x128xf32>
      %cst_11 = arith.constant dense<0.000000e+00> : vector<128xf32>
      %16 = vector.multi_reduction <add>, %15, %cst_11 [0] : vector<8x128xf32> to vector<128xf32>
      %17 = vector.shape_cast %16 : vector<128xf32> to vector<1x128xf32>
      %cst_12 = arith.constant 8.000000e+00 : f32
      %18 = vector.broadcast %cst_12 : f32 to vector<1x128xf32>
      %19 = arith.divf %17, %18 : vector<1x128xf32>
      %20 = vector.broadcast %19 : vector<1x128xf32> to vector<8x128xf32>
      %21 = arith.subf %15, %20 : vector<8x128xf32>
      %22 = arith.mulf %21, %21 : vector<8x128xf32>
      %cst_13 = arith.constant dense<0.000000e+00> : vector<128xf32>
      %23 = vector.multi_reduction <add>, %22, %cst_13 [0] : vector<8x128xf32> to vector<128xf32>
      %24 = vector.shape_cast %23 : vector<128xf32> to vector<1x128xf32>
      %cst_14 = arith.constant 8.000000e+00 : f32
      %25 = vector.broadcast %cst_14 : f32 to vector<1x128xf32>
      %26 = arith.divf %24, %25 : vector<1x128xf32>
      %c0_15 = arith.constant 0 : index
      %c0_16 = arith.constant 0 : index
      %27 = vector.load %arg4[%c0_15, %c0_16] : memref<1x128xf32, #tpu.memory_space<vmem>>, vector<1x128xf32>
      %cst_17 = arith.constant 9.99999974E-6 : f32
      %28 = vector.broadcast %cst_17 : f32 to vector<1x128xf32>
      %29 = arith.addf %26, %28 : vector<1x128xf32>
      %30 = math.rsqrt %29 : vector<1x128xf32>
      %31 = arith.mulf %27, %30 : vector<1x128xf32>
      %c0_18 = arith.constant 0 : index
      %c0_19 = arith.constant 0 : index
      %32 = vector.load %arg5[%c0_18, %c0_19] : memref<1x128xf32, #tpu.memory_space<vmem>>, vector<1x128xf32>
      %33 = arith.mulf %19, %31 : vector<1x128xf32>
      %34 = arith.subf %32, %33 : vector<1x128xf32>
      %35 = vector.broadcast %31 : vector<1x128xf32> to vector<8x128xf32>
      %36 = arith.mulf %15, %35 : vector<8x128xf32>
      %37 = vector.broadcast %34 : vector<1x128xf32> to vector<8x128xf32>
      %38 = arith.addf %36, %37 : vector<8x128xf32>
      %cst_20 = arith.constant 3.000000e+00 : f32
      %39 = vector.broadcast %cst_20 : f32 to vector<8x128xf32>
      %40 = arith.addf %38, %39 : vector<8x128xf32>
      %cst_21 = arith.constant 0.000000e+00 : f32
      %cst_22 = arith.constant 6.000000e+00 : f32
      %41 = vector.broadcast %cst_21 : f32 to vector<8x128xf32>
      %42 = arith.maximumf %41, %40 : vector<8x128xf32>
      %43 = vector.broadcast %cst_22 : f32 to vector<8x128xf32>
      %44 = arith.minimumf %43, %42 : vector<8x128xf32>
      %45 = arith.mulf %38, %44 : vector<8x128xf32>
      %cst_23 = arith.constant 0.166666672 : f32
      %46 = vector.broadcast %cst_23 : f32 to vector<8x128xf32>
      %47 = arith.mulf %45, %46 : vector<8x128xf32>
      %c0_24 = arith.constant 0 : index
      %c0_25 = arith.constant 0 : index
      %48 = vector.load %arg6[%c0_24, %c0_25] : memref<8x128xf32, #tpu.memory_space<vmem>>, vector<8x128xf32>
      tpu.vector_store %arg6[%c0_24, %c0_25], %47 {strides = array<i32>} : memref<8x128xf32, #tpu.memory_space<vmem>>, vector<8x128xf32>,
    } else {
    }
    return
  }
  func.func @transform_0(%arg0: i32, %arg1: i32) -> (i32, i32) {
    %c0_i32 = arith.constant 0 : i32
    %c0_i32_0 = arith.constant 0 : i32
    %c0_i32_1 = arith.constant 0 : i32
    return %c0_i32, %c0_i32_0 : i32, i32
  }
  func.func @transform_1(%arg0: i32, %arg1: i32) -> (i32, i32) {
    %c0_i32 = arith.constant 0 : i32
    return %arg1, %arg0 : i32, i32
  }
  func.func @transform_2(%arg0: i32, %arg1: i32) -> (i32, i32) {
    %c0_i32 = arith.constant 0 : i32
    %c0_i32_0 = arith.constant 0 : i32
    return %c0_i32, %arg0 : i32, i32
  }
  func.func @transform_3(%arg0: i32, %arg1: i32) -> (i32, i32) {
    %c0_i32 = arith.constant 0 : i32
    %c0_i32_0 = arith.constant 0 : i32
    return %c0_i32, %arg0 : i32, i32
  }
  func.func @transform_4(%arg0: i32, %arg1: i32) -> (i32, i32) {
    %c0_i32 = arith.constant 0 : i32
    %c0_i32_0 = arith.constant 0 : i32
    return %c0_i32, %arg0 : i32, i32
  }
}

</mosaic_0001>

<bundles_post_ra>
// kernel: tpu_custom_call.1
= control target key start
LH: loop header
LB: loop body
LE: loop exit
PB: predicated region body
PF: predicated region fallthrough
CT: control target
= control target key end

     0   :  { %9 = vsyncpa [#allocation3], 0  ;;  %s436_s0 = inlined_call_operand.hbm [shape: bf16[8,128], index: 0, kind: input, shape index: {}]   ;;  %s437_s1 = inlined_call_operand.hbm [shape: bf16[128,128], index: 1, kind: input, shape index: {}]   ;;  %s438_s2 = inlined_call_operand.vmem [shape: f32[1,128], index: 2, kind: input, shape index: {}]   ;;  %s439_s3 = inlined_call_operand.vmem [shape: f32[1,128], index: 3, kind: input, shape index: {}]   ;;  %s440_s4 = inlined_call_operand.hbm [shape: f32[8,128], index: 4, kind: output, shape index: {}]  }
   0x1   :  { %10 = vsyncpa [#allocation6], 0 }
   0x2   :  { %11 = vsyncpa [#allocation4], 0  ;;  %s355_s15 = smov [#allocation2]   ;;  %s356_s17 = smov [#allocation5]  }
   0x3   :  { %s18_s16 = sshll.u32 %s355_s15, 4  ;;  %s27_s18 = sshll.u32 %s356_s17, 4  ;;  %s19_s16 = int_to_ptr.vmem [resolvable:$true] %s18_s16  ;;  %s387_s18 = int_to_ptr.vmem [resolvable:$true] %s27_s18 }
   0x4   :  { %s283_s21 = scalar_lea.hbm %s436_s0, 64 }
   0x5   :  { %p284_p0 = scmp.ne.s32.totalorder %s436_s0, %s283_s21  ;;  %p287_p1 = scmp.lt.u32.totalorder %s283_s21, %s436_s0 }
   0x7   :  { %p289_p2 = pnand %p287_p1, %p284_p0 }
   0x9   :  { %292 = shalt.err (!%p289_p2)
}
   0xa   :  { %s293_s26 = scalar_lea.vmem %s19_s16, 64  ;;  %p298_p4 = scmp.lt.s32.totalorder %s19_s16, %s19_s16 }
   0xb   :  { %p294_p3 = scmp.ne.s32.totalorder %s19_s16, %s293_s26  ;;  %p299_p5 = scmp.lt.s32.totalorder %s293_s26, %s293_s26 }
   0xd   :  { %p300_p6 = por %p299_p5, %p298_p4 }
   0xf   :  { %p301_p7 = pnand %p300_p6, %p294_p3 }
  0x11   :  { %304 = shalt.err (!%p301_p7)
}
  0x12   :  { %21 = dma.hbm_to_vmem [thread:$0]  %s436_s0, 64, %s19_s16, [#allocation3]  }
  0x13   :  { %s305_s5 = scalar_lea.hbm %s437_s1, 1024 }
  0x14   :  { %p306_p8 = scmp.ne.s32.totalorder %s437_s1, %s305_s5  ;;  %p309_p9 = scmp.lt.u32.totalorder %s305_s5, %s437_s1 }
  0x16   :  { %p311_p10 = pnand %p309_p9, %p306_p8 }
  0x18   :  { %314 = shalt.err (!%p311_p10)
}
  0x19   :  { %s315_s10 = scalar_lea.vmem %s387_s18, 1024  ;;  %p320_p12 = scmp.lt.s32.totalorder %s387_s18, %s387_s18 }
  0x1a   :  { %p316_p11 = scmp.ne.s32.totalorder %s387_s18, %s315_s10  ;;  %p321_p13 = scmp.lt.s32.totalorder %s315_s10, %s315_s10 }
  0x1c   :  { %p322_p0 = por %p321_p13, %p320_p12 }
  0x1e   :  { %p323_p1 = pnand %p322_p0, %p316_p11 }
  0x20   :  { %326 = shalt.err (!%p323_p1)
}
  0x21   :  { %s357_s0 = smov 64   ;;  %s358_s11 = smov 4  }
  0x22   :  { %33 = dma.hbm_to_vmem [thread:$0]  %s437_s1, 1024, %s387_s18, [#allocation6], %s357_s0, %s357_s0, %s358_s11  }
  0x23   :  { %349 = dma.done.wait [#allocation3], 64  }
  0x24   :  { %350 = vsyncadd [#allocation3], 4294967232 }
  0x25   :  { %351 = dma.done.wait [#allocation6], 1024  }
  0x26   :  { %352 = vsyncadd [#allocation6], 4294966272  ;;  %v359_v0 = vmov 0.0   ;;  %vm360_vm0 = vmmov 0   ;;  %v273_v1 = vld [vmem:[#allocation5] sm:$0xff]   ;;  %v274_v2 = vld [vmem:[#allocation5 + $0x8] sm:$0xff]   ;;  %v192_v31 = vlaneseq }
  0x27   :  { %246 = vmatprep.subr.bf16.mxu0 %v359_v0  ;;  %262 = vmatprep.mubr.msk.bf16.mxu0 %vm360_vm0, %v359_v0  ;;  %v275_v3 = vld [vmem:[#allocation5 + $0x10] sm:$0xff]   ;;  %v276_v4 = vld [vmem:[#allocation5 + $0x18] sm:$0xff]   ;;  %v277_v5 = vld [vmem:[#allocation5 + $0x20] sm:$0xff]   ;;  %s361_s17 = smov [#allocation7]  }
  0x28   :  { %247 = vmatpush3.bf16.msra.mxu0 %v273_v1  ;;  %v278_v6 = vld [vmem:[#allocation5 + $0x28] sm:$0xff]   ;;  %v279_v7 = vld [vmem:[#allocation5 + $0x30] sm:$0xff]   ;;  %v280_v8 = vld [vmem:[#allocation5 + $0x38] sm:$0xff]   ;;  %v193_v32 = vshrl.u32 %v192_v31, 7  ;;  %s217_s18 = sshll.u32 %s361_s17, 4  ;;  %s218_s18 = int_to_ptr.vmem [resolvable:$true] %s217_s18 }
  0x29   :  { %248 = vmatprep.subr.bf16.mxu0 %v359_v0  ;;  %v55_v9 = vld [vmem:[#allocation2] sm:$0xf]  ;;  %p332_p3 = scmp.lt.s32.totalorder %s218_s18, %s218_s18 }
  0x2a   :  { %v184_v33 = vld [vmem:[%s438_s2] sm:$0x1]  ;;  %v194_v34 = vsub.s32 0, %v193_v32  ;;  %s327_s2 = scalar_lea.vmem %s218_s18, 128 }
  0x2b   :  { %v188_v37 = vld [vmem:[%s439_s3] sm:$0x1]  ;;  %p328_p2 = scmp.ne.s32.totalorder %s218_s18, %s327_s2  ;;  %p333_p4 = scmp.lt.s32.totalorder %s327_s2, %s327_s2 }
  0x2c   :  { %249 = vmatpush3.bf16.msra.mxu0 %v274_v2 }
  0x2d   :  { %250 = vmatprep.subr.bf16.mxu0 %v359_v0  ;;  %p334_p5 = por %p333_p4, %p332_p3 }
  0x2f   :  { %p335_p6 = pnand %p334_p5, %p328_p2 }
  0x30   :  { %251 = vmatpush3.bf16.msra.mxu0 %v275_v3 }
  0x31   :  { %252 = vmatprep.subr.bf16.mxu0 %v359_v0 }
  0x34   :  { %253 = vmatpush3.bf16.msra.mxu0 %v276_v4 }
  0x35   :  { %254 = vmatprep.subr.bf16.mxu0 %v359_v0 }
  0x38   :  { %255 = vmatpush3.bf16.msra.mxu0 %v277_v5 }
  0x39   :  { %256 = vmatprep.subr.bf16.mxu0 %v359_v0 }
  0x3c   :  { %257 = vmatpush3.bf16.msra.mxu0 %v278_v6 }
  0x3d   :  { %258 = vmatprep.subr.bf16.mxu0 %v359_v0 }
  0x40   :  { %259 = vmatpush3.bf16.msra.mxu0 %v279_v7 }
  0x41   :  { %260 = vmatprep.subr.bf16.mxu0 %v359_v0 }
  0x44   :  { %261 = vmatpush3.bf16.msra.mxu0 %v280_v8 }
  0x47   :  { %263 = vmatmul.mubr.bf16.vlgmr.msra.gmra.mrb[0].mxu0 %v55_v9 }
 0x11a   :  { %v155_v10 = vpop.f32.mrb[0].mxu0 }
 0x11b   :  { %v264_v11 = vpop.f32.mrb[1].mxu0  ;;  %v167_v14 = vrot.slane %v155_v10, 4 }
 0x11c   :  { %v158_v12 = vpop.f32.mrb[2].mxu0 }
 0x11d   :  { %v265_v13 = vpop.f32.mrb[3].mxu0  ;;  %v168_v15 = vadd.f32 %v167_v14, %v155_v10 }
 0x11f   :  { %v169_v16 = vrot.slane %v168_v15, 2 }
 0x121   :  { %v170_v17 = vadd.f32 %v169_v16, %v168_v15 }
 0x123   :  { %v171_v18 = vrot.slane %v170_v17, 1 }
 0x125   :  { %v172_v19 = vadd.f32 %v171_v18, %v170_v17 }
 0x127   :  { %v174_v20 = vmul.f32 0.125, %v172_v19 }
 0x129   :  { %v175_v21 = vsub.f32 %v155_v10, %v174_v20 }
 0x12b   :  { %v176_v22 = vmul.f32 %v175_v21, %v175_v21 }
 0x12d   :  { %v177_v23 = vrot.slane %v176_v22, 4 }
 0x12f   :  { %v178_v24 = vadd.f32 %v177_v23, %v176_v22 }
 0x131   :  { %v179_v25 = vrot.slane %v178_v24, 2 }
 0x133   :  { %v180_v26 = vadd.f32 %v179_v25, %v178_v24 }
 0x135   :  { %v181_v27 = vrot.slane %v180_v26, 1 }
 0x137   :  { %v182_v28 = vadd.f32 %v181_v27, %v180_v26 }
 0x139   :  { %v183_v29 = vmul.f32 0.125, %v182_v28 }
 0x13b   :  { %v185_v30 = vadd.f32 1e-05, %v183_v29 }
 0x13d   :  { %281 = vrsqrt.f32 %v185_v30 }
 0x147   :  { %v282_v35 = vpop.eup %281 }
 0x148   :  { %v187_v36 = vmul.f32 %v282_v35, %v184_v33 }
 0x14a   :  { %v189_v38 = vmul.f32 %v187_v36, %v174_v20  ;;  %v195_v39 = vrot.slane %v187_v36, %v194_v34 }
 0x14c   :  { %v190_v40 = vsub.f32 %v188_v37, %v189_v38  ;;  %v197_v41 = vmul.f32 %v195_v39, %v155_v10 }
 0x14e   :  { %v202_v42 = vrot.slane %v190_v40, %v194_v34 }
 0x150   :  { %v204_v43 = vadd.f32 %v202_v42, %v197_v41 }
 0x152   :  { %v205_v44 = vadd.f32 3.0, %v204_v43 }
 0x154   :  { %v206_v45 = vmax.f32 %v205_v44, 0.0 }
 0x156   :  { %v207_v46 = vmin.f32 %v206_v45, 6.0 }
 0x158   :  { %v208_v47 = vmul.f32 %v207_v46, %v204_v43 }
 0x15a   :  { %v209_v48 = vmul.f32 0.16666667, %v208_v47 }
 0x15c   :  { %210 = vst [vmem:[#allocation7] sm:$0xff] %v209_v48 }
 0x15d   :  { %338 = shalt.err (!%p335_p6)
}
 0x15e   :  { %s339_s20 = scalar_lea.hbm %s440_s4, 128 }
 0x15f   :  { %p340_p7 = scmp.ne.s32.totalorder %s440_s4, %s339_s20  ;;  %p343_p8 = scmp.lt.u32.totalorder %s339_s20, %s440_s4 }
 0x161   :  { %p345_p9 = pnand %p343_p8, %p340_p7 }
 0x163   :  { %348 = shalt.err (!%p345_p9)
}
 0x164   :  { %220 = dma.vmem_to_hbm [thread:$0]  %s218_s18, 128, %s440_s4, [#allocation4]  }
 0x165   :  { %353 = dma.done.wait [#allocation4], 128  }
 0x166   :  { %354 = vsyncadd [#allocation4], 4294967168 }
 0x167   :  { %224 = vsyncpa [#allocation3], 1 }
 0x168   :  { %225 = vsyncpa [#allocation6], 1 }
 0x169   :  { %226 = vsyncpa [#allocation4], 1 }

</bundles_post_ra>
